<compile_context>
chip_gen: v7x
topology: tpu7x:2x2x1
jax: 0.10.0
libtpu: 0.0.40
codegen_flags: <defaults>
</compile_context>

<pallas_src>
import jax
import jax.numpy as jnp
from jax.experimental import pallas as pl
from jax.experimental.pallas import tpu as pltpu


def _round_up(n, m):
    return ((n + m - 1) // m) * m


_MIN_GRID_STEPS = 8  # >=2 for pipelining, >=4 per TC on v7x megacore


def _pick_tile(batch, block_b):
    """Batch tile: multiple of 8, targets >= _MIN_GRID_STEPS grid steps,
    rounded to a multiple of 128 once large enough (full MXU pushes on v5e),
    capped at block_b so VMEM stays small on v7x (64 MiB / TC)."""
    tb = _round_up(max(pl.cdiv(batch, _MIN_GRID_STEPS), 8), 8)
    if tb >= 128:
        tb = _round_up(tb, 128)
    return max(min(tb, block_b), 8)


def _vpg_kernel(x_ref, w1_ref, b1_ref, w2_ref, b2_ref, o_ref):
    tb, obs = x_ref.shape
    hidden = w1_ref.shape[1]
    x = x_ref[...]                                        # (TB, obs) f32

    if obs <= 16:
        # Tiny contraction: do layer 1 on the VPU as `obs` rank-1 broadcast
        # FMAs instead of a nearly-empty K=obs MXU push.  These FMAs are free
        # filler under the layer-2 vmatmul.
        h = jnp.broadcast_to(b1_ref[...], (tb, hidden))
        for k in range(obs):                              # static unroll
            h = h + x[:, k:k + 1] * w1_ref[k:k + 1, :]    # (TB,1)*(1,128)
    else:
        h = jnp.dot(x, w1_ref[...],
                    preferred_element_type=jnp.float32) + b1_ref[...]

    h = jnp.maximum(h, 0.0)                               # f32 epilogue (v5e-safe)

    # Layer 2 on the MXU: f32 h @ f32 W2, f32 accumulation (no bf16 rounding
    # of the operands — the kernel is DMA/launch bound, not MXU bound).
    out = jnp.dot(h, w2_ref[...], preferred_element_type=jnp.float32)
    o_ref[...] = (out + b2_ref[...]).astype(o_ref.dtype)


def prepare_params(w1, b1, w2, b2):
    """One-time (init/load) parameter prep — keep this OUT of the hot path.

    Pads W2/b2 to a lane-dense multiple-of-128 output width and normalizes
    dtypes/shapes, so vpg_forward launches no per-call conversion kernels.
    """
    hidden, act_size = w2.shape
    act_p = _round_up(act_size, 128)
    w1f = w1.astype(jnp.float32)
    b1f = b1.astype(jnp.float32).reshape(1, hidden)
    w2p = jnp.pad(w2.astype(jnp.float32), ((0, 0), (0, act_p - act_size)))
    b2p = jnp.pad(b2.astype(jnp.float32).reshape(1, act_size),
                  ((0, 0), (0, act_p - act_size)))
    return (w1f, b1f, w2p, b2p, act_size)


def vpg_forward(x, params, *, block_b=512, out_dtype=jnp.bfloat16):
    """Pallas implementation of VPG.forward (the actor MLP).

    x      : (B, obs_size) float32
    params : output of prepare_params(w1, b1, w2, b2)
    returns logits (B, act_size) float32
    """
    w1, b1, w2_p, b2_p, act_size = params
    B, obs_size = x.shape
    obs_w1, hidden = w1.shape
    hidden2, act_p = w2_p.shape
    assert obs_w1 == obs_size and hidden2 == hidden
    assert act_p % 128 == 0
    assert block_b % 8 == 0, "batch tile cap must be a multiple of 8 (sublane)"

    TB = _pick_tile(B, block_b)
    B_p = _round_up(B, TB)
    grid = (B_p // TB,)

    # Only wrapper-side data movement left: an (optional) f32 batch-row pad.
    x_p = x if B_p == B else jnp.pad(x, ((0, B_p - B), (0, 0)))

    vmem = pltpu.MemorySpace.VMEM
    out_bytes = jnp.dtype(out_dtype).itemsize
    flops = 2 * B_p * (obs_size * hidden + hidden * act_p)
    bytes_accessed = (x_p.size * 4 + w1.size * 4 + b1.size * 4
                      + w2_p.size * 4 + b2_p.size * 4 + B_p * act_p * out_bytes)

    out = pl.pallas_call(
        _vpg_kernel,
        out_shape=jax.ShapeDtypeStruct((B_p, act_p), out_dtype),
        grid_spec=pltpu.PrefetchScalarGridSpec(
            num_scalar_prefetch=0,
            grid=grid,
            in_specs=[
                # streamed batch tiles (f32, cast-free)
                pl.BlockSpec((TB, obs_size), lambda i: (i, 0), memory_space=vmem),
                # weights / biases: same block every step -> VMEM resident
                pl.BlockSpec((obs_size, hidden), lambda i: (0, 0), memory_space=vmem),
                pl.BlockSpec((1, hidden), lambda i: (0, 0), memory_space=vmem),
                pl.BlockSpec((hidden, act_p), lambda i: (0, 0), memory_space=vmem),
                pl.BlockSpec((1, act_p), lambda i: (0, 0), memory_space=vmem),
            ],
            # Lane-dense (act_p = multiple of 128) unmasked stores; bf16 halves
            # the writeback bytes.  If profiling still shows an exposed output
            # DMA, add pipeline_mode=pl.Buffered(3) here.
            out_specs=pl.BlockSpec((TB, act_p), lambda i: (i, 0), memory_space=vmem),
        ),
        compiler_params=pltpu.CompilerParams(
            dimension_semantics=("parallel",),   # shard batch tiles across TCs (v7x)
        ),
        cost_estimate=pl.CostEstimate(
            flops=flops, transcendentals=0, bytes_accessed=bytes_accessed),
    )(x_p, w1, b1, w2_p, b2_p)

    # Strip batch padding + lane padding; return f32 logits (PyTorch semantics).
    return out[:B, :act_size].astype(jnp.float32)


def init_params(key, obs_size, act_size, hidden=128):
    """Deterministic init mimicking nn.Linear's uniform(-1/sqrt(fan_in), ...)."""
    k1, k2, k3, k4 = jax.random.split(key, 4)
    bound1 = 1.0 / jnp.sqrt(obs_size)
    bound2 = 1.0 / jnp.sqrt(hidden)
    w1 = jax.random.uniform(k1, (obs_size, hidden), jnp.float32, -bound1, bound1)
    b1 = jax.random.uniform(k2, (1, hidden), jnp.float32, -bound1, bound1)
    w2 = jax.random.uniform(k3, (hidden, act_size), jnp.float32, -bound2, bound2)
    b2 = jax.random.uniform(k4, (1, act_size), jnp.float32, -bound2, bound2)
    return w1, b1, w2, b2


if __name__ == "__main__":
    # CartPole-like sizes: obs_size=4, act_size=2, hidden=128 (fixed in VPG).
    # batch=300 -> TB=40, B padded to 320, grid=(8,): exercises the multi-step
    # pipeline, minimal batch padding, lane-dense 128-col output padding and
    # the bf16 writeback + wrapper slice/upcast.
    obs_size, act_size, batch = 4, 2, 300

    key = jax.random.PRNGKey(0)
    kx, kp = jax.random.split(key)
    x = jax.random.normal(kx, (batch, obs_size), dtype=jnp.float32)
    w1, b1, w2, b2 = init_params(kp, obs_size, act_size)

    params = prepare_params(w1, b1, w2, b2)   # once, outside the hot path
    logits = vpg_forward(x, params)
    jax.block_until_ready(logits)

    # Pure-JAX f32 reference.  Compute is f32 end-to-end in the kernel; the
    # only rounding is the bf16 output store (<= ~0.4% relative).
    ref = jnp.maximum(x @ w1 + b1, 0.0) @ w2 + b2
    assert logits.shape == (batch, act_size)
    assert logits.dtype == jnp.float32
    assert jnp.allclose(logits, ref, atol=2e-2, rtol=2e-2), float(
        jnp.max(jnp.abs(logits - ref)))

    # Exact-store variant (f32 writeback) should match the reference tightly.
    logits_f32 = vpg_forward(x, params, out_dtype=jnp.float32)
    jax.block_until_ready(logits_f32)
    assert jnp.allclose(logits_f32, ref, atol=1e-4, rtol=1e-4), float(
        jnp.max(jnp.abs(logits_f32 - ref)))

    # TODO(synk): get_action/train (Categorical sampling, Adam update, rtgs
    # backward scan) are host-side training utilities, not part of forward().
    print("KERNEL_OK")
</pallas_src>

<mosaic_0001>
module attributes {stable_mosaic.version = 11 : i64} {
  func.func @_vpg_kernel(%arg0: i32, %arg1: memref<40x4xf32, #tpu.memory_space<vmem>>, %arg2: memref<4x128xf32, #tpu.memory_space<vmem>>, %arg3: memref<1x128xf32, #tpu.memory_space<vmem>>, %arg4: memref<128x128xf32, #tpu.memory_space<vmem>>, %arg5: memref<1x128xf32, #tpu.memory_space<vmem>>, %arg6: memref<40x128xbf16, #tpu.memory_space<vmem>>) attributes {dimension_semantics = [#tpu.dimension_semantics<parallel>], iteration_bounds = array<i64: 8>, scalar_prefetch = 0 : i64, scratch_operands = 0 : i64, tpu.core_type = #tpu.core_type<tc>, window_params = [{transform_indices = @transform_0, window_bounds = array<i64: 40, 4>}, {pipeline_mode = #tpu.pipeline_mode<synchronous>, transform_indices = @transform_1, window_bounds = array<i64: 4, 128>}, {pipeline_mode = #tpu.pipeline_mode<synchronous>, transform_indices = @transform_2, window_bounds = array<i64: 1, 128>}, {pipeline_mode = #tpu.pipeline_mode<synchronous>, transform_indices = @transform_3, window_bounds = array<i64: 128, 128>}, {pipeline_mode = #tpu.pipeline_mode<synchronous>, transform_indices = @transform_4, window_bounds = array<i64: 1, 128>}, {transform_indices = @transform_5, window_bounds = array<i64: 40, 128>}]} {
    %c0 = arith.constant 0 : index
    %c0_0 = arith.constant 0 : index
    %0 = vector.load %arg1[%c0, %c0_0] : memref<40x4xf32, #tpu.memory_space<vmem>>, vector<40x4xf32>
    %c0_1 = arith.constant 0 : index
    %c0_2 = arith.constant 0 : index
    %1 = vector.load %arg3[%c0_1, %c0_2] : memref<1x128xf32, #tpu.memory_space<vmem>>, vector<1x128xf32>
    %2 = vector.shape_cast %1 : vector<1x128xf32> to vector<1x128xf32>
    %3 = vector.broadcast %2 : vector<1x128xf32> to vector<40x128xf32>
    %4 = vector.extract_strided_slice %0 {offsets = [0, 0], sizes = [40, 1], strides = [1, 1]} : vector<40x4xf32> to vector<40x1xf32>
    %c0_3 = arith.constant 0 : index
    %c0_4 = arith.constant 0 : index
    %5 = vector.load %arg2[%c0_3, %c0_4] : memref<4x128xf32, #tpu.memory_space<vmem>>, vector<1x128xf32>
    %6 = vector.broadcast %4 : vector<40x1xf32> to vector<40x128xf32>
    %7 = vector.broadcast %5 : vector<1x128xf32> to vector<40x128xf32>
    %8 = arith.mulf %6, %7 : vector<40x128xf32>
    %9 = arith.addf %3, %8 : vector<40x128xf32>
    %10 = vector.extract_strided_slice %0 {offsets = [0, 1], sizes = [40, 1], strides = [1, 1]} : vector<40x4xf32> to vector<40x1xf32>
    %c1 = arith.constant 1 : index
    %c0_5 = arith.constant 0 : index
    %11 = vector.load %arg2[%c1, %c0_5] : memref<4x128xf32, #tpu.memory_space<vmem>>, vector<1x128xf32>
    %12 = vector.broadcast %10 : vector<40x1xf32> to vector<40x128xf32>
    %13 = vector.broadcast %11 : vector<1x128xf32> to vector<40x128xf32>
    %14 = arith.mulf %12, %13 : vector<40x128xf32>
    %15 = arith.addf %9, %14 : vector<40x128xf32>
    %16 = vector.extract_strided_slice %0 {offsets = [0, 2], sizes = [40, 1], strides = [1, 1]} : vector<40x4xf32> to vector<40x1xf32>
    %c2 = arith.constant 2 : index
    %c0_6 = arith.constant 0 : index
    %17 = vector.load %arg2[%c2, %c0_6] : memref<4x128xf32, #tpu.memory_space<vmem>>, vector<1x128xf32>
    %18 = vector.broadcast %16 : vector<40x1xf32> to vector<40x128xf32>
    %19 = vector.broadcast %17 : vector<1x128xf32> to vector<40x128xf32>
    %20 = arith.mulf %18, %19 : vector<40x128xf32>
    %21 = arith.addf %15, %20 : vector<40x128xf32>
    %22 = vector.extract_strided_slice %0 {offsets = [0, 3], sizes = [40, 1], strides = [1, 1]} : vector<40x4xf32> to vector<40x1xf32>
    %c3 = arith.constant 3 : index
    %c0_7 = arith.constant 0 : index
    %23 = vector.load %arg2[%c3, %c0_7] : memref<4x128xf32, #tpu.memory_space<vmem>>, vector<1x128xf32>
    %24 = vector.broadcast %22 : vector<40x1xf32> to vector<40x128xf32>
    %25 = vector.broadcast %23 : vector<1x128xf32> to vector<40x128xf32>
    %26 = arith.mulf %24, %25 : vector<40x128xf32>
    %27 = arith.addf %21, %26 : vector<40x128xf32>
    %cst = arith.constant 0.000000e+00 : f32
    %28 = vector.broadcast %cst : f32 to vector<40x128xf32>
    %29 = arith.maximumf %27, %28 : vector<40x128xf32>
    %c0_8 = arith.constant 0 : index
    %c0_9 = arith.constant 0 : index
    %30 = vector.load %arg4[%c0_8, %c0_9] : memref<128x128xf32, #tpu.memory_space<vmem>>, vector<128x128xf32>
    %cst_10 = arith.constant dense<0.000000e+00> : vector<40x128xf32>
    %31 = tpu.matmul %29, %30, %cst_10 {dimension_numbers = #tpu.dot_dimension_numbers<[1], [0], [0], [1], [0, 0, 1, 1], [], []>} : vector<40x128xf32>, vector<128x128xf32>, vector<40x128xf32> -> vector<40x128xf32>
    %c0_11 = arith.constant 0 : index
    %c0_12 = arith.constant 0 : index
    %32 = vector.load %arg5[%c0_11, %c0_12] : memref<1x128xf32, #tpu.memory_space<vmem>>, vector<1x128xf32>
    %33 = vector.broadcast %32 : vector<1x128xf32> to vector<40x128xf32>
    %34 = arith.addf %31, %33 : vector<40x128xf32>
    %35 = arith.truncf %34 : vector<40x128xf32> to vector<40x128xbf16>
    %c0_13 = arith.constant 0 : index
    %c0_14 = arith.constant 0 : index
    %36 = vector.load %arg6[%c0_13, %c0_14] : memref<40x128xbf16, #tpu.memory_space<vmem>>, vector<40x128xbf16>
    tpu.vector_store %arg6[%c0_13, %c0_14], %35 {strides = array<i32>} : memref<40x128xbf16, #tpu.memory_space<vmem>>, vector<40x128xbf16>,
    return
  }
  func.func @transform_0(%arg0: i32) -> (i32, i32) {
    %c0_i32 = arith.constant 0 : i32
    %c0_i32_0 = arith.constant 0 : i32
    return %arg0, %c0_i32 : i32, i32
  }
  func.func @transform_1(%arg0: i32) -> (i32, i32) {
    %c0_i32 = arith.constant 0 : i32
    %c0_i32_0 = arith.constant 0 : i32
    %c0_i32_1 = arith.constant 0 : i32
    return %c0_i32, %c0_i32_0 : i32, i32
  }
  func.func @transform_2(%arg0: i32) -> (i32, i32) {
    %c0_i32 = arith.constant 0 : i32
    %c0_i32_0 = arith.constant 0 : i32
    %c0_i32_1 = arith.constant 0 : i32
    return %c0_i32, %c0_i32_0 : i32, i32
  }
  func.func @transform_3(%arg0: i32) -> (i32, i32) {
    %c0_i32 = arith.constant 0 : i32
    %c0_i32_0 = arith.constant 0 : i32
    %c0_i32_1 = arith.constant 0 : i32
    return %c0_i32, %c0_i32_0 : i32, i32
  }
  func.func @transform_4(%arg0: i32) -> (i32, i32) {
    %c0_i32 = arith.constant 0 : i32
    %c0_i32_0 = arith.constant 0 : i32
    %c0_i32_1 = arith.constant 0 : i32
    return %c0_i32, %c0_i32_0 : i32, i32
  }
  func.func @transform_5(%arg0: i32) -> (i32, i32) {
    %c0_i32 = arith.constant 0 : i32
    %c0_i32_0 = arith.constant 0 : i32
    return %arg0, %c0_i32 : i32, i32
  }
}

</mosaic_0001>

<bundles_post_ra>
// kernel: tpu_custom_call.1
= control target key start
LH: loop header
LB: loop body
LE: loop exit
PB: predicated region body
PF: predicated region fallthrough
CT: control target
= control target key end

     0   :  { %10 = vsyncpa [#allocation3], 0  ;;  %s1134_s0 = inlined_call_operand.vmem [shape: f32[320,4], index: 0, kind: input, shape index: {}]   ;;  %s1135_s1 = inlined_call_operand.vmem [shape: f32[4,128], index: 1, kind: input, shape index: {}]   ;;  %s1136_s2 = inlined_call_operand.vmem [shape: f32[1,128], index: 2, kind: input, shape index: {}]   ;;  %s1137_s3 = inlined_call_operand.vmem [shape: f32[128,128], index: 3, kind: input, shape index: {}]   ;;  %s1138_s4 = inlined_call_operand.vmem [shape: f32[1,128], index: 4, kind: input, shape index: {}]   ;;  %s1139_s5 = inlined_call_operand.hbm [shape: bf16[320,128], index: 5, kind: output, shape index: {}]  }
   0x1   :  { %12 = vsyncpa [#allocation3 + $0x1], 0  ;;  %s914_s18 = smov 0   ;;  %s916_s19 = smov 0  }
   0x2   :  { %s918_s20 = smov 0   ;;  %s920_s21 = smov 0  }
   0x3 LB: > { %s935_s22 = sadd.s32 4294967295, %s872_s21   ;;  %s603_s23 = sadd.s32 4294967294, %s872_s21   ;;  %s872_s21 = sphi %s920_s21, %s1145_s21   ;;  %s868_s20 = sphi %s918_s20, %s1144_s20   ;;  %s864_s19 = sphi %s916_s19, %s1143_s19   ;;  %s860_s18 = sphi %s914_s18, %s1142_s18  }
   0x4   : > { %s939_s24 = sadd.s32 1, %s872_s21   ;;  %s135_s25 = sadd.s32 1, %s868_s20 }
   0x5   : > { %s132_s26 = ssub.s32 %s872_s21, %s939_s24  ;;  %p145_p0 = scmp.ne.s32.totalorder %s868_s20, %s864_s19 }
   0x6   : > { %p133_p1 = scmp.eq.s32.totalorder %s132_s26, 0  ;;  %p146_p2 = scmp.eq.s32.totalorder %s935_s22, 7 }
   0x7   : > { %p151_p3 = scmp.ne.s32.totalorder %s864_s19, %s860_s18  ;;  %p152_p4 = scmp.eq.s32.totalorder %s603_s23, 7 }
   0x8   : > { %s950_s27 = scalar_select %p133_p1, %s868_s20, %s135_s25  }
   0x9   : > { %p952_p5 = por %p146_p2, %p145_p0  ;;  %p956_p6 = por %p152_p4, %p151_p3 }
   0xa   : > { %p606_p7 = scmp.ge.s32.totalorder %s872_s21, 1  ;;  %p191_p8 = scmp.lt.s32.totalorder %s872_s21, 9 }
   0xc   : > { %p192_p9 = pnand %p606_p7, %p191_p8 }
   0xd   : > { %s219_s30 = smul.u32 (!%p192_p9), 5, %s935_s22  ;;  %v388_v0 = vld [vmem:[%s1137_s3] sm:$0xff] (!%p192_p9)  ;;  %v874_v1 = vmov (!%p192_p9), 0   ;;  %v389_v2 = vld [vmem:[%s1137_s3 + $0x8] sm:$0xff] (!%p192_p9)  ;;  %v390_v3 = vld [vmem:[%s1137_s3 + $0x10] sm:$0xff] (!%p192_p9)  ;;  %v875_v5 = vmov (!%p192_p9), 0.0|0.0  }
   0xe   : > { %195 = sbr.rel (%p192_p9) target bundleno = 442 (0x1ba), region = 40  ;;  %797 = vset.pattern.permute.xlu1 (!%p192_p9), %v874_v1  ;;  %796 = vset.pattern.permute.xlu0 (!%p192_p9), %v874_v1  ;;  %v391_v4 = vld [vmem:[%s1137_s3 + $0x18] sm:$0xff] (!%p192_p9)  ;;  %v708_v6 = vpack.c.bf16 (!%p192_p9), %v389_v2, %v388_v0  ;;  %v392_v8 = vld [vmem:[%s1137_s3 + $0x20] sm:$0xff] (!%p192_p9)  ;;  %v393_v9 = vld [vmem:[%s1137_s3 + $0x28] sm:$0xff] (!%p192_p9)  ;;  %v876_v17 = vmov (!%p192_p9), 3   ;;  %v877_v21 = vmov (!%p192_p9), 2  }
   0xf   : > { %p220_p10 = scmp.lt.s32.totalorder (!%p192_p9), %s219_s30, 39  ;;  %707 = vmatprep.subr.bf16.mxu0 (!%p192_p9), %v875_v5  ;;  %731 = vmatprep.subr.bf16.mxu1 (!%p192_p9), %v875_v5  ;;  %v711_v7 = vpack.c.bf16 (!%p192_p9), %v391_v4, %v390_v3  ;;  %v714_v12 = vpack.c.bf16 (!%p192_p9), %v393_v9, %v392_v8  ;;  %v394_v13 = vld [vmem:[%s1137_s3 + $0x30] sm:$0xff] (!%p192_p9)  ;;  %v395_v14 = vld [vmem:[%s1137_s3 + $0x38] sm:$0xff] (!%p192_p9)  ;;  %v396_v18 = vld [vmem:[%s1137_s3 + $0x40] sm:$0xff] (!%p192_p9)  ;;  %v878_v24 = vmov (!%p192_p9), 1   ;;  %vm879_vm0 = vmmov (!%p192_p9), 0  }
  0x10   : > { %709 = vmatpush3.bf16.msra.mxu0 (!%p192_p9), %v708_v6  ;;  %739 = vmatpush3.bf16.msra.mxu1 (!%p192_p9), %v708_v6  ;;  %v717_v16 = vpack.c.bf16 (!%p192_p9), %v395_v14, %v394_v13  ;;  %v397_v19 = vld [vmem:[%s1137_s3 + $0x48] sm:$0xff] (!%p192_p9)  ;;  %v398_v22 = vld [vmem:[%s1137_s3 + $0x50] sm:$0xff] (!%p192_p9)  ;;  %v399_v23 = vld [vmem:[%s1137_s3 + $0x58] sm:$0xff] (!%p192_p9)  ;;  %v880_v34 = vmov (!%p192_p9), 0.0   ;;  %s216_s26 = sand.u32 (!%p192_p9), 1, %s864_s19   ;;  %s627_s10 = smul.u32 (!%p192_p9), 320, %s935_s22 }
  0x11   : > { %710 = vmatprep.subr.bf16.mxu0 (!%p192_p9), %v875_v5  ;;  %732 = vmatprep.subr.bf16.mxu1 (!%p192_p9), %v875_v5  ;;  %v720_v20 = vpack.c.bf16 (!%p192_p9), %v397_v19, %v396_v18  ;;  %v723_v25 = vpack.c.bf16 (!%p192_p9), %v399_v23, %v398_v22  ;;  %v400_v26 = vld [vmem:[%s1137_s3 + $0x60] sm:$0xff] (!%p192_p9)  ;;  %v401_v27 = vld [vmem:[%s1137_s3 + $0x68] sm:$0xff] (!%p192_p9)  ;;  %v402_v31 = vld [vmem:[%s1137_s3 + $0x70] sm:$0xff] (!%p192_p9)  ;;  %s1093_s22 = scalar_lea.sflag (!%p192_p9), [#allocation3], %s216_s26  ;;  %s881_s15 = smov (!%p192_p9), [#allocation2]  }
  0x12   : > { %v726_v29 = vpack.c.bf16 (!%p192_p9), %v401_v27, %v400_v26  ;;  %v403_v32 = vld [vmem:[%s1137_s3 + $0x78] sm:$0xff] (!%p192_p9)  ;;  %692 = vmatprep.mubr.msk.f32.mxu0 (!%p192_p9), %vm879_vm0, %v880_v34  ;;  %701 = vmatprep.mubr.msk.f32.mxu1 (!%p192_p9), %vm879_vm0, %v880_v34  ;;  %v609_v37 = vld [vmem:[%s1135_s1] ss:$0 sm:$0xff] (!%p192_p9)  ;;  %v610_v42 = vld [vmem:[%s1135_s1 + $0x1] ss:$0 sm:$0xff] (!%p192_p9)  ;;  %s1091_s13 = scalar_lea.hbm (!%p192_p9), %s1139_s5, %s627_s10  ;;  %s814_s16 = sshll.u32 (!%p192_p9), %s881_s15, 4  ;;  %s815_s16 = int_to_ptr.vmem [resolvable:$false] %s814_s16 }
  0x13   : > { %v729_v33 = vpack.c.bf16 (!%p192_p9), %v403_v32, %v402_v31  ;;  %v608_v41 = vld [vmem:[%s1136_s2] ss:$0 sm:$0xff] (!%p192_p9)  ;;  %v612_v45 = vld [vmem:[%s1135_s1 + $0x3] ss:$0 sm:$0xff] (!%p192_p9)  ;;  %v611_v46 = vld [vmem:[%s1135_s1 + $0x2] ss:$0 sm:$0xff] (!%p192_p9) }
  0x14   : > { %712 = vmatpush3.bf16.msra.mxu0 (!%p192_p9), %v711_v7  ;;  %740 = vmatpush3.bf16.msra.mxu1 (!%p192_p9), %v711_v7  ;;  %s816_s17 = scalar_lea.vmem (!%p192_p9), %s815_s16, 640 }
  0x15   : > { %s1147_s30 = smov (!%p220_p10, %s219_s30), 39  ;;  %713 = vmatprep.subr.bf16.mxu0 %v875_v5  ;;  %733 = vmatprep.subr.bf16.mxu1 %v875_v5 }
  0x16   : > { %s607_s23 = sshll.u32 %s1147_s30, 3  ;;  %s747_s30 = smul.u32 20, %s216_s26 }
  0x17   : > { %s990_s6 = scalar_lea.vmem %s1134_s0, %s607_s23 }
  0x18   : > { %v993_v10 = vld [vmem:[%s990_s6 + $0x8] sm:$0xff]  ;;  %v226_v11 = vld [vmem:[%s990_s6] sm:$0xff]  ;;  %v1004_v15 = vld [vmem:[%s990_s6 + $0x18] sm:$0xff]  ;;  %715 = vmatpush3.bf16.msra.mxu0 %v714_v12  ;;  %741 = vmatpush3.bf16.msra.mxu1 %v714_v12  ;;  %s218_s9 = scalar_lea.vmem [#allocation2], %s747_s30 }
  0x19   : > { %246 = vperm.xlu1 %797, %v993_v10   ;;  %241 = vperm.xlu0 %796, %v226_v11   ;;  %v230_v28 = vld [vmem:[%s990_s6 + $0x20] sm:$0xff]  ;;  %v228_v30 = vld [vmem:[%s990_s6 + $0x10] sm:$0xff]  ;;  %s541_s6 = sshll.u32 %s218_s9, 4  ;;  %s1086_s6 = int_to_ptr.vmem [resolvable:$true] %s541_s6 }
  0x1a   : > { %716 = vmatprep.subr.bf16.mxu0 %v875_v5  ;;  %734 = vmatprep.subr.bf16.mxu1 %v875_v5  ;;  %s810_s14 = scalar_lea.vmem %s1086_s6, 320  ;;  %p817_p0 = scmp.lt.s32.totalorder %s1086_s6, %s815_s16 }
  0x1b   : > { %p811_p11 = scmp.ne.s32.totalorder %s1086_s6, %s810_s14  ;;  %p818_p1 = scmp.lt.s32.totalorder %s816_s17, %s810_s14 }
  0x1c   : > { %718 = vmatpush3.bf16.msra.mxu0 %v717_v16  ;;  %742 = vmatpush3.bf16.msra.mxu1 %v717_v16 }
  0x1d   : > { %256 = vperm.xlu1 %797, %v1004_v15   ;;  %800 = vset.pattern.permute.xlu0 %v876_v17  ;;  %p812_p12 = pnand %p811_p11, %p952_p5  ;;  %p819_p2 = por %p818_p1, %p817_p0 }
  0x1e   : > { %350 = vperm.xlu0 %800, %v226_v11   ;;  %719 = vmatprep.subr.bf16.mxu0 %v875_v5 }
  0x1f   : > { %735 = vmatprep.subr.bf16.mxu1 %v875_v5  ;;  %p813_p13 = pneg %p812_p12 }
  0x20   : > { %721 = vmatpush3.bf16.msra.mxu0 %v720_v20  ;;  %743 = vmatpush3.bf16.msra.mxu1 %v720_v20 }
  0x21   : > { %798 = vset.pattern.permute.xlu1 %v877_v21  ;;  %722 = vmatprep.subr.bf16.mxu0 %v875_v5  ;;  %p820_p3 = pnand %p819_p2, %p813_p13 }
  0x22   : > { %315 = vperm.xlu1 %798, %v226_v11   ;;  %801 = vset.pattern.permute.xlu0 %v878_v24 }
  0x23   : > { %280 = vperm.xlu0 %801, %v226_v11   ;;  %736 = vmatprep.subr.bf16.mxu1 %v875_v5 }
  0x24   : > { %724 = vmatpush3.bf16.msra.mxu0 %v723_v25  ;;  %744 = vmatpush3.bf16.msra.mxu1 %v723_v25 }
  0x25   : > { %725 = vmatprep.subr.bf16.mxu0 %v875_v5  ;;  %737 = vmatprep.subr.bf16.mxu1 %v875_v5 }
  0x26   : > { %799 = vset.pattern.permute.xlu1 %v878_v24 }
  0x27   : > { %292 = vperm.xlu1 %799, %v1004_v15   ;;  %284 = vperm.xlu0 %801, %v993_v10  }
  0x28   : > { %727 = vmatpush3.bf16.msra.mxu0 %v726_v29  ;;  %745 = vmatpush3.bf16.msra.mxu1 %v726_v29 }
  0x29   : > { %728 = vmatprep.subr.bf16.mxu0 %v875_v5  ;;  %738 = vmatprep.subr.bf16.mxu1 %v875_v5 }
  0x2b   : > { %802 = vset.pattern.permute.xlu1 %v874_v1  ;;  %296 = vperm.xlu0 %801, %v230_v28  }
  0x2c   : > { %251 = vperm.xlu1 %802, %v228_v30   ;;  %730 = vmatpush3.bf16.msra.mxu0 %v729_v33 }
  0x2d   : > { %746 = vmatpush3.bf16.msra.mxu1 %v729_v33 }
  0x2f   : > { %805 = vset.pattern.permute.xlu0 %v877_v21 }
  0x30   : > { %261 = vperm.xlu1 %802, %v230_v28   ;;  %319 = vperm.xlu0 %805, %v993_v10  }
  0x34   : > { %803 = vset.pattern.permute.xlu1 %v877_v21  ;;  %323 = vperm.xlu0 %805, %v228_v30  }
  0x35   : > { %327 = vperm.xlu1 %803, %v1004_v15  }
  0x38   : > { %809 = vset.pattern.permute.xlu0 %v876_v17 }
  0x39   : > { %804 = vset.pattern.permute.xlu1 %v878_v24  ;;  %366 = vperm.xlu0 %809, %v230_v28  }
  0x3a   : > { %288 = vperm.xlu1 %804, %v228_v30  }
  0x3e   : > { %806 = vset.pattern.permute.xlu1 %v876_v17 }
  0x3f   : > { %354 = vperm.xlu1 %806, %v993_v10  }
  0x43   : > { %362 = vperm.xlu1 %806, %v1004_v15  }
  0x47   : > { %807 = vset.pattern.permute.xlu1 %v877_v21 }
  0x48   : > { %331 = vperm.xlu1 %807, %v230_v28  }
  0x4c   : > { %808 = vset.pattern.permute.xlu1 %v876_v17 }
  0x4d   : > { %358 = vperm.xlu1 %808, %v228_v30  }
  0x98   : > { %v247_v35 = vpop.permute.xlu1 %246  ;;  %v242_v36 = vpop.permute.xlu0 %241 }
  0x99   : > { %v268_v39 = vmul.f32 %v609_v37, %v242_v36  ;;  %v269_v61 = vmul.f32 %v609_v37, %v247_v35 }
  0x9b   : > { %v273_v43 = vadd.f32 %v608_v41, %v268_v39  ;;  %v274_v1 = vadd.f32 %v608_v41, %v269_v61 }
  0x9c   : > { %v257_v38 = vpop.permute.xlu1 %256 }
  0x9d   : > { %v351_v40 = vpop.permute.xlu0 %350  ;;  %v271_v2 = vmul.f32 %v609_v37, %v257_v38 }
  0x9e   : > { %v373_v49 = vmul.f32 %v612_v45, %v351_v40 }
  0x9f   : > { %v276_v7 = vadd.f32 %v608_v41, %v271_v2 }
  0xa1   : > { %v316_v44 = vpop.permute.xlu1 %315 }
  0xa2   : > { %v281_v47 = vpop.permute.xlu0 %280  ;;  %v338_v50 = vmul.f32 %v611_v46, %v316_v44  ;;  %v613_v44 = vld [vmem:[%s1138_s4] ss:$0 sm:$0xff] }
  0xa3   : > { %v303_v48 = vmul.f32 %v610_v42, %v281_v47 }
  0xa5   : > { %v308_v51 = vadd.f32 %v303_v48, %v273_v43 }
  0xa6   : > { %v293_v52 = vpop.permute.xlu1 %292  ;;  %v285_v57 = vpop.permute.xlu0 %284 }
  0xa7   : > { %v343_v53 = vadd.f32 %v338_v50, %v308_v51  ;;  %v304_v63 = vmul.f32 %v610_v42, %v285_v57  ;;  %v306_v4 = vmul.f32 %v610_v42, %v293_v52 }
  0xa9   : > { %v378_v54 = vadd.f32 %v373_v49, %v343_v53  ;;  %v309_v5 = vadd.f32 %v304_v63, %v274_v1  ;;  %v311_v12 = vadd.f32 %v306_v4, %v276_v7 }
  0xaa   : > { %v297_v59 = vpop.permute.xlu0 %296 }
  0xab   : > { %v252_v55 = vpop.permute.xlu1 %251  ;;  %v383_v56 = vmax.f32 %v378_v54, 0.0  ;;  %v307_v20 = vmul.f32 %v610_v42, %v297_v59 }
  0xac   : > { %v270_v16 = vmul.f32 %v609_v37, %v252_v55 }
  0xad   : > { %693 = vmatmul.mubr.f32.vlgmr.msra.gmra.mrb[0].mxu0 %v383_v56 }
  0xae   : > { %695 = vmatprep.mubr.msk.f32.mxu0 %vm879_vm0, %v880_v34  ;;  %v275_v25 = vadd.f32 %v608_v41, %v270_v16 }
  0xaf   : > { %v262_v58 = vpop.permute.xlu1 %261  ;;  %v320_v62 = vpop.permute.xlu0 %319 }
  0xb0   : > { %v339_v3 = vmul.f32 %v611_v46, %v320_v62  ;;  %v272_v11 = vmul.f32 %v609_v37, %v262_v58 }
  0xb2   : > { %v344_v8 = vadd.f32 %v339_v3, %v309_v5  ;;  %v277_v21 = vadd.f32 %v608_v41, %v272_v11 }
  0xb3   : > { %v324_v13 = vpop.permute.xlu0 %323 }
  0xb4   : > { %v328_v60 = vpop.permute.xlu1 %327  ;;  %v312_v28 = vadd.f32 %v307_v20, %v277_v21  ;;  %v340_v32 = vmul.f32 %v611_v46, %v324_v13 }
  0xb5   : > { %v341_v9 = vmul.f32 %v611_v46, %v328_v60 }
  0xb7   : > { %v346_v17 = vadd.f32 %v341_v9, %v311_v12 }
  0xb8   : > { %v367_v24 = vpop.permute.xlu0 %366 }
  0xb9   : > { %v289_v0 = vpop.permute.xlu1 %288  ;;  %v377_v30 = vmul.f32 %v612_v45, %v367_v24 }
  0xba   : > { %v305_v22 = vmul.f32 %v610_v42, %v289_v0 }
  0xbc   : > { %v310_v31 = vadd.f32 %v305_v22, %v275_v25 }
  0xbe   : > { %v355_v6 = vpop.permute.xlu1 %354  ;;  %v345_v37 = vadd.f32 %v340_v32, %v310_v31 }
  0xbf   : > { %v374_v10 = vmul.f32 %v612_v45, %v355_v6 }
  0xc1   : > { %v379_v14 = vadd.f32 %v374_v10, %v344_v8 }
  0xc2   : > { %v363_v15 = vpop.permute.xlu1 %362 }
  0xc3   : > { %v384_v18 = vmax.f32 %v379_v14, 0.0  ;;  %v376_v19 = vmul.f32 %v612_v45, %v363_v15 }
  0xc5   : > { %v381_v23 = vadd.f32 %v376_v19, %v346_v17  ;;  %696 = vmatmul.mubr.f32.gmra.mrb[2].mxu0 %v384_v18 }
  0xc6   : > { %698 = vmatprep.mubr.msk.f32.mxu0 %vm879_vm0, %v880_v34 }
  0xc7   : > { %v386_v26 = vmax.f32 %v381_v23, 0.0  ;;  %v332_v27 = vpop.permute.xlu1 %331 }
  0xc8   : > { %v342_v29 = vmul.f32 %v611_v46, %v332_v27 }
  0xc9   : > { %702 = vmatmul.mubr.f32.vlgmr.msra.gmra.mrb[0].mxu1 %v386_v26 }
  0xca   : > { %v347_v33 = vadd.f32 %v342_v29, %v312_v28  ;;  %704 = vmatprep.mubr.msk.f32.mxu1 %vm879_vm0, %v880_v34 }
  0xcc   : > { %v382_v35 = vadd.f32 %v377_v30, %v347_v33  ;;  %v359_v36 = vpop.permute.xlu1 %358 }
  0xcd   : > { %v375_v38 = vmul.f32 %v612_v45, %v359_v36 }
  0xce   : > { %v387_v39 = vmax.f32 %v382_v35, 0.0 }
  0xcf   : > { %v380_v40 = vadd.f32 %v375_v38, %v345_v37 }
  0xd0   : > { %705 = vmatmul.mubr.f32.gmra.mrb[2].mxu1 %v387_v39 }
  0xd1   : > { %v385_v41 = vmax.f32 %v380_v40, 0.0 }
  0xd3   : > { %699 = vmatmul.mubr.f32.gmra.mrb[4].mxu0 %v385_v41 }
 0x180   : > { %v477_v42 = vpop.f32.mrb[0].mxu0 }
 0x181   : > { %v694_v43 = vpop.f32.mrb[1].mxu0  ;;  %v478_v34 = vadd.f32 %v613_v44, %v477_v42 }
 0x198   : > { %v482_v46 = vpop.f32.mrb[2].mxu0 }
 0x199   : > { %v483_v47 = vadd.f32 %v613_v44, %v482_v46  ;;  %v697_v48 = vpop.f32.mrb[3].mxu0 }
 0x19b   : > { %v631_v49 = vpack.c.bf16 %v483_v47, %v478_v34 }
 0x19c   : > { %v492_v45 = vpop.f32.mrb[0].mxu1 }
 0x19d   : > { %632 = vst [vmem:[%s218_s9] sm:$0xff] %v631_v49   ;;  %v703_v50 = vpop.f32.mrb[1].mxu1  ;;  %v493_v56 = vadd.f32 %v613_v44, %v492_v45 }
 0x1a3   : > { %v497_v51 = vpop.f32.mrb[2].mxu1 }
 0x1a4   : > { %v498_v52 = vadd.f32 %v613_v44, %v497_v51  ;;  %v706_v53 = vpop.f32.mrb[3].mxu1 }
 0x1a6   : > { %v626_v54 = vpack.c.bf16 %v498_v52, %v498_v52  ;;  %v487_v55 = vpop.f32.mrb[4].mxu0 }
 0x1a7   : > { %v488_v57 = vadd.f32 %v613_v44, %v487_v55  ;;  %v700_v58 = vpop.f32.mrb[5].mxu0 }
 0x1a8   : > { %526 = vst [vmem:[%s218_s9 + $0x10] sm:$0xf] %v626_v54 }
 0x1a9   : > { %v636_v59 = vpack.c.bf16 %v493_v56, %v488_v57 }
 0x1ab   : > { %638 = vst [vmem:[%s218_s9 + $0x8] sm:$0xff] %v636_v59  }
 0x1ac   : > { %823 = shalt.err (!%p820_p3)
}
 0x1ad   : > { %s824_s23 = scalar_lea.hbm %s1091_s13, 320  ;;  %s828_s7 = scalar_lea.hbm %s1139_s5, 2560 }
 0x1ae   : > { %p825_p4 = scmp.ne.s32.totalorder %s1091_s13, %s824_s23  ;;  %p829_p9 = scmp.lt.u32.totalorder %s1091_s13, %s1139_s5 }
 0x1af   : > { %p830_p10 = scmp.lt.u32.totalorder %s828_s7, %s824_s23  ;;  %p832_p12 = scmp.lt.u32.totalorder %s824_s23, %s1091_s13 }
 0x1b0   : > { %p826_p7 = pnand %p825_p4, %p952_p5 }
 0x1b1   : > { %p831_p11 = por %p830_p10, %p829_p9 }
 0x1b2   : > { %p827_p8 = pneg %p826_p7 }
 0x1b3   : > { %p833_p13 = por %p832_p12, %p831_p11 }
 0x1b5   : > { %p834_p0 = pnand %p833_p13, %p827_p8 }
 0x1b7   : > { %837 = shalt.err (!%p834_p0)
}
 0x1b8   : > { %s882_s9 = smov 64   ;;  %s883_s10 = smov 4  }
 0x1b9   : > { %748 = dma.vmem_to_hbm [thread:$0]  (%p952_p5), %s1086_s6, 320, %s1091_s13, %s1093_s22, %s882_s9, %s882_s9, %s883_s10  }
 0x1ba PF: > { %p754_p1 = scmp.ge.s32.totalorder %s872_s21, 2  ;;  %s556_s11 = sand.u32 1, %s860_s18  }
 0x1bb   : > { %s557_s12 = scalar_lea.sflag [#allocation3], %s556_s11 }
 0x1bc   : > { %p751_p2 = pnand %p754_p1, %p956_p6 }
 0x1be   : > { %855 = dma.done.wait (!%p751_p2), %s557_s12, 320  }
 0x1bf   : > { %857 = vsyncadd (!%p751_p2), %s557_s12, 4294966976  ;;  %p15_p3 = scmp.ge.s32.totalorder %s939_s24, 10   ;;  %s1142_s18 = smov %s864_s19 }
 0x1c0   : > { %s1143_s19 = smov %s868_s20  ;;  %s1144_s20 = smov %s950_s27 }
 0x1c1   : > { %s1145_s21 = smov %s939_s24  ;;  %17 = sbr.rel (!%p15_p3) target bundleno = 3 (0x3), region = 75 }
 0x1c8   :  { %562 = vsyncpa [#allocation3], 1 }
 0x1c9   :  { %564 = vsyncpa [#allocation3 + $0x1], 1 }

</bundles_post_ra>
